<compile_context>
chip_gen: v5e
topology: v5e:2x2
jax: 0.10.0
libtpu: 0.0.40
codegen_flags: <defaults>
</compile_context>

<pallas_src>
import math

import jax
import jax.numpy as jnp
from jax.experimental import pallas as pl
from jax.experimental.pallas import tpu as pltpu


def _cdiv(a: int, b: int) -> int:
    return -(-a // b)


def _build_pe(d_model: int, max_len: int = 5000) -> jnp.ndarray:
    """Replicates the PyTorch __init__ buffer: shape (max_len, 1, d_model), f32."""
    assert d_model % 2 == 0, "PositionalEncoding requires an even d_model"
    position = jnp.arange(0, max_len, dtype=jnp.float32)[:, None]            # (max_len, 1)
    div_term = jnp.exp(
        jnp.arange(0, d_model, 2, dtype=jnp.float32) * (-math.log(10000.0) / d_model)
    )                                                                         # (d_model//2,)
    angles = position * div_term                                              # (max_len, d//2)
    pe = jnp.zeros((max_len, d_model), dtype=jnp.float32)
    pe = pe.at[:, 0::2].set(jnp.sin(angles))
    pe = pe.at[:, 1::2].set(jnp.cos(angles))
    # unsqueeze(0).transpose(0, 1) -> (max_len, 1, d_model)
    return pe[:, None, :]


def _prefer_even_tile(extent: int, tile: int, multiple: int = 1) -> int:
    """Best-effort: shrink `tile` so the tile count along `extent` is even
    (keeps v7x's two TensorCores balanced); result stays a multiple of
    `multiple` (legality) and never exceeds the original tile."""
    n = _cdiv(extent, tile)
    if n >= 2 and n % 2 == 1:
        cand = _cdiv(_cdiv(extent, n + 1), multiple) * multiple
        if 0 < cand <= tile and cand < extent and _cdiv(extent, cand) % 2 == 0:
            return cand
    return tile


def _add_pe_kernel_3d(x_ref, pe_ref, o_ref):
    # x_ref/o_ref: (tile_s, tile_b, D); pe_ref: (tile_s, D) f32 (batch dim squeezed).
    # Add in f32 (pe stays f32), cast only the stored result.
    o_ref[...] = (x_ref[...] + pe_ref[...][:, None, :]).astype(o_ref.dtype)


def _make_flat_kernel(tile_b: int, d_model: int):
    # x_ref/o_ref: (tile_s, tile_b * D) lane-dense slab; pe_ref: (tile_s, D) f32.
    # tile_b <= 8, so the batch broadcast is a short fully-unrolled loop of
    # static slices (guaranteed lowering); the HBM writeback of the whole block
    # remains one dense DMA.
    def kernel(x_ref, pe_ref, o_ref):
        pe = pe_ref[...]
        for b in range(tile_b):
            sl = slice(b * d_model, (b + 1) * d_model)
            o_ref[:, sl] = (x_ref[:, sl] + pe).astype(o_ref.dtype)
    return kernel


def positional_encoding_forward(
    x: jnp.ndarray,
    pe: jnp.ndarray,
    *,
    target_block_bytes: int = 2 * 1024 * 1024,   # ~85% of HBM roofline; safe on v5e/v6e/v7x
    donate_x: bool = False,
) -> jnp.ndarray:
    """x: (S, B, D); pe: (max_len, 1, D) f32. Returns x + pe[:S] in x.dtype."""
    S, B, D = x.shape
    assert pe.ndim == 3 and pe.shape[1] == 1 and pe.shape[2] == D
    assert pe.shape[0] >= S, "max_len must cover the sequence length"
    itemsize = jnp.dtype(x.dtype).itemsize

    aligned_3d = (B % 8 == 0) and (D % 128 == 0)
    use_flat = (B <= 8) and not aligned_3d
    io_aliases = {0: 0} if donate_x else {}
    csemantics = pltpu.CompilerParams(dimension_semantics=("parallel", "parallel"))

    if use_flat:
        # ---------- lane-dense 2D path: x viewed as (S, B*D) ----------
        cols = B * D
        # S-tiles must be multiples of 8 (sublane alignment), so budget the
        # columns such that an (8, tile_cols) block stays ~target-sized.
        col_budget = max(1, target_block_bytes // (8 * itemsize))
        if cols <= col_budget:
            tile_cols = cols
        else:
            # tile_cols must be a multiple of 128 (lane tiling) and of D
            # (so pe's broadcast pattern stays periodic inside every block).
            unit = (128 * D) // math.gcd(128, D)
            tile_cols = min(cols, max(unit, (col_budget // unit) * unit))
        tile_b = tile_cols // D

        raw_s = max(1, target_block_bytes // (tile_cols * itemsize))
        if raw_s >= S:
            tile_s = S
        else:
            tile_s = min(S, max(8, (raw_s // 8) * 8))
            if tile_s < S:
                tile_s = _prefer_even_tile(S, tile_s, multiple=8)

        grid = (_cdiv(S, tile_s), _cdiv(cols, tile_cols))
        out = pl.pallas_call(
            _make_flat_kernel(tile_b, D),
            out_shape=jax.ShapeDtypeStruct((S, cols), x.dtype),
            grid=grid,
            in_specs=[
                pl.BlockSpec((tile_s, tile_cols), lambda i, j: (i, j)),
                # pe window follows the S tile only; size-1 batch dim squeezed.
                pl.BlockSpec((tile_s, None, D), lambda i, j: (i, 0, 0)),
            ],
            out_specs=pl.BlockSpec((tile_s, tile_cols), lambda i, j: (i, j)),
            input_output_aliases=io_aliases,
            compiler_params=csemantics,
        )(x.reshape(S, cols), pe)          # contiguous reshape: free under jit
        return out.reshape(S, B, D)

    # ---------- 3D path (aligned shapes, or B > 8): block (tile_s, tile_b, D) ----------
    row_bytes = B * D * itemsize
    if row_bytes <= target_block_bytes:
        tile_b = B
    else:
        # Tile the batch axis in sublane-aligned chunks so a single block never
        # blows the scoped-VMEM budget (ragged tail handled by masked writes).
        tile_b = min(B, max(8, (target_block_bytes // max(1, D * itemsize)) // 8 * 8))
    tile_s = max(1, min(S, target_block_bytes // max(1, tile_b * D * itemsize)))
    tile_s = _prefer_even_tile(S, tile_s)

    grid = (_cdiv(S, tile_s), _cdiv(B, tile_b))
    return pl.pallas_call(
        _add_pe_kernel_3d,
        out_shape=jax.ShapeDtypeStruct((S, B, D), x.dtype),
        grid=grid,
        in_specs=[
            pl.BlockSpec((tile_s, tile_b, D), lambda i, j: (i, j, 0)),
            pl.BlockSpec((tile_s, None, D), lambda i, j: (i, 0, 0)),
        ],
        out_specs=pl.BlockSpec((tile_s, tile_b, D), lambda i, j: (i, j, 0)),
        input_output_aliases=io_aliases,
        compiler_params=csemantics,
    )(x, pe)


if __name__ == "__main__":
    key = jax.random.PRNGKey(0)
    k1, k2, k3, k4 = jax.random.split(key, 4)

    # --- Case 1: small unaligned batch/d_model -> lane-dense flattened path ---
    d_model, max_len, seq, batch = 32, 64, 16, 2
    pe = _build_pe(d_model, max_len)
    x = jax.random.normal(k1, (seq, batch, d_model), dtype=jnp.float32)
    ref = x + pe[:seq]

    out = jax.block_until_ready(positional_encoding_forward(x, pe))
    assert out.shape == (seq, batch, d_model)
    assert jnp.allclose(out, ref, atol=1e-6), "mismatch (flat path, default tiling)"

    # Force a multi-tile S grid (tile_s=8 -> 2 S-tiles) through the same path.
    out_tiled = jax.block_until_ready(
        positional_encoding_forward(x, pe, target_block_bytes=1024))
    assert jnp.allclose(out_tiled, ref, atol=1e-6), "mismatch (flat path, multi-tile)"

    # --- Case 2: aligned (B%8==0, D%128==0), bf16 x -> 3D path with S and B tiling ---
    d2, s2, b2 = 128, 8, 16
    pe2 = _build_pe(d2, 64)
    x2 = jax.random.normal(k2, (s2, b2, d2), dtype=jnp.float32).astype(jnp.bfloat16)
    ref2 = (x2.astype(jnp.float32) + pe2[:s2]).astype(jnp.bfloat16)
    out2 = jax.block_until_ready(
        positional_encoding_forward(x2, pe2, target_block_bytes=2048))
    assert out2.shape == x2.shape and out2.dtype == jnp.bfloat16
    assert jnp.allclose(out2.astype(jnp.float32), ref2.astype(jnp.float32), atol=1e-2), \
        "mismatch (3D path, bf16)"

    # --- Case 3: B=3 (unaligned) with D=128, lane-tiled columns + ragged tail ---
    d3, s3, b3 = 128, 16, 3
    pe3 = _build_pe(d3, 64)
    x3 = jax.random.normal(k3, (s3, b3, d3), dtype=jnp.float32)
    ref3 = x3 + pe3[:s3]
    out3 = jax.block_until_ready(
        positional_encoding_forward(x3, pe3, target_block_bytes=8192))
    assert jnp.allclose(out3, ref3, atol=1e-6), "mismatch (flat path, lane-tiled)"

    # --- Case 4: donated / aliased output (in-place-style) under jit ---
    fwd_donated = jax.jit(lambda xx: positional_encoding_forward(xx, pe, donate_x=True),
                          donate_argnums=0)
    x4 = jax.random.normal(k4, (seq, batch, d_model), dtype=jnp.float32)
    ref4 = x4 + pe[:seq]
    out4 = jax.block_until_ready(fwd_donated(x4))
    assert jnp.allclose(out4, ref4, atol=1e-6), "mismatch (donated/aliased path)"

    print("KERNEL_OK")
</pallas_src>

<mosaic_0001>
module attributes {stable_mosaic.version = 11 : i64} {
  func.func @kernel(%arg0: i32, %arg1: i32, %arg2: memref<16x64xf32, #tpu.memory_space<vmem>>, %arg3: memref<16x1x32xf32, #tpu.memory_space<vmem>>, %arg4: memref<16x64xf32, #tpu.memory_space<vmem>>) attributes {dimension_semantics = [#tpu.dimension_semantics<parallel>, #tpu.dimension_semantics<parallel>], iteration_bounds = array<i64: 1, 1>, scalar_prefetch = 0 : i64, scratch_operands = 0 : i64, tpu.core_type = #tpu.core_type<tc>, window_params = [{transform_indices = @transform_0, window_bounds = array<i64: 16, 64>}, {transform_indices = @transform_1, window_bounds = array<i64: 16, 1, 32>}, {transform_indices = @transform_2, window_bounds = array<i64: 16, 64>}]} {
    %c0 = arith.constant 0 : index
    %c0_0 = arith.constant 0 : index
    %c0_1 = arith.constant 0 : index
    %0 = vector.load %arg3[%c0, %c0_0, %c0_1] : memref<16x1x32xf32, #tpu.memory_space<vmem>>, vector<16x1x32xf32>
    %1 = vector.shape_cast %0 : vector<16x1x32xf32> to vector<16x32xf32>
    %c0_2 = arith.constant 0 : index
    %c0_3 = arith.constant 0 : index
    %2 = vector.load %arg2[%c0_2, %c0_3] : memref<16x64xf32, #tpu.memory_space<vmem>>, vector<16x32xf32>
    %3 = arith.addf %2, %1 : vector<16x32xf32>
    %c0_4 = arith.constant 0 : index
    %c0_5 = arith.constant 0 : index
    %4 = vector.load %arg4[%c0_4, %c0_5] : memref<16x64xf32, #tpu.memory_space<vmem>>, vector<16x32xf32>
    tpu.vector_store %arg4[%c0_4, %c0_5], %3 {strides = array<i32>} : memref<16x64xf32, #tpu.memory_space<vmem>>, vector<16x32xf32>,
    %c0_6 = arith.constant 0 : index
    %c32 = arith.constant 32 : index
    %5 = vector.load %arg2[%c0_6, %c32] : memref<16x64xf32, #tpu.memory_space<vmem>>, vector<16x32xf32>
    %6 = arith.addf %5, %1 : vector<16x32xf32>
    %c0_7 = arith.constant 0 : index
    %c32_8 = arith.constant 32 : index
    %7 = vector.load %arg4[%c0_7, %c32_8] : memref<16x64xf32, #tpu.memory_space<vmem>>, vector<16x32xf32>
    tpu.vector_store %arg4[%c0_7, %c32_8], %6 {strides = array<i32>} : memref<16x64xf32, #tpu.memory_space<vmem>>, vector<16x32xf32>,
    return
  }
  func.func @transform_0(%arg0: i32, %arg1: i32) -> (i32, i32) {
    %c0_i32 = arith.constant 0 : i32
    return %arg0, %arg1 : i32, i32
  }
  func.func @transform_1(%arg0: i32, %arg1: i32) -> (i32, i32, i32) {
    %c0_i32 = arith.constant 0 : i32
    %c0_i32_0 = arith.constant 0 : i32
    %c0_i32_1 = arith.constant 0 : i32
    return %arg0, %c0_i32, %c0_i32_0 : i32, i32, i32
  }
  func.func @transform_2(%arg0: i32, %arg1: i32) -> (i32, i32) {
    %c0_i32 = arith.constant 0 : i32
    return %arg0, %arg1 : i32, i32
  }
}

</mosaic_0001>

<bundles_post_ra>
// kernel: tpu_custom_call.1
= control target key start
LH: loop header
LB: loop body
LE: loop exit
PB: predicated region body
PF: predicated region fallthrough
CT: control target
= control target key end

     0   :  { %s242_s0 = inlined_call_operand.vmem [shape: f32[16,64], index: 0, kind: input, shape index: {}]   ;;  %s243_s1 = inlined_call_operand.vmem [shape: f32[64,1,32], index: 1, kind: input, shape index: {}]   ;;  %s244_s2 = inlined_call_operand.hbm [shape: f32[16,64], index: 2, kind: output, shape index: {}]  }
   0x1   :  { %v12_v0 = vld [vmem:[%s243_s1] sm:$0x1]  ;;  %v13_v1 = vld [vmem:[%s243_s1 + $0x1] sm:$0x1]  ;;  %v14_v2 = vld [vmem:[%s243_s1 + $0x2] sm:$0x1] }
   0x2   :  { %v15_v3 = vld [vmem:[%s243_s1 + $0x3] sm:$0x1]  ;;  %46 = vst [vmem:[#allocation1] ss:$9 sm:$0xff] %v12_v0  ;;  %v16_v4 = vld [vmem:[%s243_s1 + $0x4] sm:$0x1] }
   0x3   :  { %48 = vst [vmem:[#allocation1 + $0x1] ss:$9 sm:$0xff] %v13_v1 }
   0x4   :  { %7 = vsyncpa [#allocation3], 0  ;;  %v17_v5 = vld [vmem:[%s243_s1 + $0x5] sm:$0x1]  ;;  %50 = vst [vmem:[#allocation1 + $0x2] ss:$9 sm:$0xff] %v14_v2 }
   0x5   :  { %v18_v6 = vld [vmem:[%s243_s1 + $0x6] sm:$0x1]  ;;  %52 = vst [vmem:[#allocation1 + $0x3] ss:$9 sm:$0xff] %v15_v3  ;;  %v19_v7 = vld [vmem:[%s243_s1 + $0x7] sm:$0x1] }
   0x6   :  { %54 = vst [vmem:[#allocation1 + $0x4] ss:$9 sm:$0xff] %v16_v4  ;;  %v20_v8 = vld [vmem:[%s243_s1 + $0x8] sm:$0x1]  ;;  %v21_v9 = vld [vmem:[%s243_s1 + $0x9] sm:$0x1] }
   0x7   :  { %56 = vst [vmem:[#allocation1 + $0x5] ss:$9 sm:$0xff] %v17_v5  ;;  %v22_v10 = vld [vmem:[%s243_s1 + $0xa] sm:$0x1]  ;;  %v23_v12 = vld [vmem:[%s243_s1 + $0xb] sm:$0x1] }
   0x8   :  { %58 = vst [vmem:[#allocation1 + $0x6] ss:$9 sm:$0xff] %v18_v6  ;;  %v24_v13 = vld [vmem:[%s243_s1 + $0xc] sm:$0x1]  ;;  %v25_v14 = vld [vmem:[%s243_s1 + $0xd] sm:$0x1] }
   0x9   :  { %60 = vst [vmem:[#allocation1 + $0x7] ss:$9 sm:$0xff] %v19_v7  ;;  %v26_v15 = vld [vmem:[%s243_s1 + $0xe] sm:$0x1]  ;;  %v27_v16 = vld [vmem:[%s243_s1 + $0xf] sm:$0x1] }
   0xa   :  { %v28_v18 = vld [vmem:[%s242_s0] sm:$0xff]  ;;  %vm75_vm0 = vcmask 261120   ;;  %s164_s1 = smov 32   ;;  %v29_v22 = vld [vmem:[%s242_s0 + $0x8] sm:$0xff]  ;;  %vm113_vm1 = vcmask 523520   ;;  %s165_s17 = smov [#allocation2]  }
   0xb   :  { %s120_s18 = sshll.u32 %s165_s17, 4  ;;  %s122_s21 = sshll.u32 %s244_s2, 4  ;;  %s121_s18 = int_to_ptr.vmem [resolvable:$true] %s120_s18  ;;  %s123_s21 = int_to_ptr.hbm [resolvable:$true] %s122_s21 }
   0xc   :  { %s166_s22 = smov 128   ;;  %s167_s0 = smov 8  }
  0x10   :  { %v61_v11 = vld [vmem:[#allocation1] sm:$0xff] }
  0x11   :  { %62 = vst [vmem:[#allocation1] ss:$9 sm:$0xff] %v20_v8  ;;  %v73_v19 = vadd.f32 %v61_v11, %v28_v18 }
  0x12   :  { %63 = vst [vmem:[#allocation1 + $0x1] ss:$9 sm:$0xff] %v21_v9 }
  0x13   :  { %64 = vst [vmem:[#allocation1 + $0x2] ss:$9 sm:$0xff] %v22_v10 }
  0x14   :  { %65 = vst [vmem:[#allocation1 + $0x3] ss:$9 sm:$0xff] %v23_v12 }
  0x15   :  { %66 = vst [vmem:[#allocation1 + $0x4] ss:$9 sm:$0xff] %v24_v13 }
  0x16   :  { %67 = vst [vmem:[#allocation1 + $0x5] ss:$9 sm:$0xff] %v25_v14 }
  0x17   :  { %68 = vst [vmem:[#allocation1 + $0x6] ss:$9 sm:$0xff] %v26_v15 }
  0x18   :  { %69 = vst [vmem:[#allocation1 + $0x7] ss:$9 sm:$0xff] %v27_v16 }
  0x19   :  { %76 = vst.msk [vmem:[#allocation2] sm:$0xff] %vm75_vm0, %v73_v19 }
  0x1f   :  { %v70_v17 = vld [vmem:[#allocation1] sm:$0xff] }
  0x20   :  { %80 = vst [vmem:[#allocation1] ss:$9 sm:$0xff] %v12_v0  ;;  %v74_v23 = vadd.f32 %v70_v17, %v29_v22 }
  0x21   :  { %82 = vst [vmem:[#allocation1 + $0x1] ss:$9 sm:$0xff] %v13_v1 }
  0x22   :  { %84 = vst [vmem:[#allocation1 + $0x2] ss:$9 sm:$0xff] %v14_v2 }
  0x23   :  { %86 = vst [vmem:[#allocation1 + $0x3] ss:$9 sm:$0xff] %v15_v3 }
  0x24   :  { %88 = vst [vmem:[#allocation1 + $0x4] ss:$9 sm:$0xff] %v16_v4 }
  0x25   :  { %90 = vst [vmem:[#allocation1 + $0x5] ss:$9 sm:$0xff] %v17_v5 }
  0x26   :  { %92 = vst [vmem:[#allocation1 + $0x6] ss:$9 sm:$0xff] %v18_v6 }
  0x27   :  { %94 = vst [vmem:[#allocation1 + $0x7] ss:$9 sm:$0xff] %v19_v7 }
  0x28   :  { %77 = vst.msk [vmem:[#allocation2 + $0x8] sm:$0xff] %vm75_vm0, %v74_v23 }
  0x2e   :  { %v95_v20 = vld [vmem:[#allocation1] sm:$0xff] }
  0x2f   :  { %105 = vrot.lane.b32.xlu0 %v95_v20, %s164_s1  ;;  %96 = vst [vmem:[#allocation1] ss:$9 sm:$0xff] %v20_v8 }
  0x30   :  { %97 = vst [vmem:[#allocation1 + $0x1] ss:$9 sm:$0xff] %v21_v9 }
  0x31   :  { %98 = vst [vmem:[#allocation1 + $0x2] ss:$9 sm:$0xff] %v22_v10 }
  0x32   :  { %99 = vst [vmem:[#allocation1 + $0x3] ss:$9 sm:$0xff] %v23_v12 }
  0x33   :  { %100 = vst [vmem:[#allocation1 + $0x4] ss:$9 sm:$0xff] %v24_v13 }
  0x34   :  { %101 = vst [vmem:[#allocation1 + $0x5] ss:$9 sm:$0xff] %v25_v14 }
  0x35   :  { %102 = vst [vmem:[#allocation1 + $0x6] ss:$9 sm:$0xff] %v26_v15 }
  0x36   :  { %103 = vst [vmem:[#allocation1 + $0x7] ss:$9 sm:$0xff] %v27_v16 }
  0x3d   :  { %v104_v21 = vld [vmem:[#allocation1] sm:$0xff] }
  0x3e   :  { %107 = vrot.lane.b32.xlu0 %v104_v21, %s164_s1 }
  0xa1   :  { %v106_v24 = vpop.permute.xlu0 %105 }
  0xa2   :  { %v111_v25 = vadd.f32 %v106_v24, %v28_v18 }
  0xa4   :  { %114 = vst.msk [vmem:[#allocation2] sm:$0xff] %vm113_vm1, %v111_v25 }
  0xb0   :  { %v108_v26 = vpop.permute.xlu0 %107 }
  0xb1   :  { %v112_v27 = vadd.f32 %v108_v26, %v29_v22 }
  0xb3   :  { %115 = vst.msk [vmem:[#allocation2 + $0x8] sm:$0xff] %vm113_vm1, %v112_v27 }
  0xb4   :  { %128 = dma.vmem_to_hbm [thread:$0]  %s121_s18, 256, %s123_s21, [#allocation3], %s166_s22, %s166_s22, %s167_s0  }
  0xb5   :  { %162 = dma.done.wait [#allocation3], 256  }
  0xb6   :  { %163 = vsyncadd [#allocation3], 4294967040 }
  0xb7   :  { %133 = vsyncpa [#allocation3], 1 }

</bundles_post_ra>
